<compile_context>
chip_gen: v5e
topology: v5e:2x2
jax: 0.10.0
libtpu: 0.0.40
codegen_flags: <defaults>
</compile_context>

<pallas_src>
import jax
import jax.numpy as jnp
from jax import lax
from jax.experimental import pallas as pl
from jax.experimental.pallas import tpu as pltpu


def _round_up(x, m):
    return ((x + m - 1) // m) * m


# ---------------------------------------------------------------------------
# Fused kernel: one-hot counts -> (counts @ table) sum-pool -> * 1/len
#               -> Linear(D, H_pad) -> ReLU -> Linear(H_pad, C_pad)
#   grid = (B_pad // TB,)  over batch row tiles ("parallel"); table & weights
#   stay resident (index (0, 0)); bf16 matmul operands, f32 accumulation.
# ---------------------------------------------------------------------------
def fused_kernel(ids_ref, inv_ref, table_ref, w1_ref, b1_ref, w2_ref, b2_ref,
                 out_ref):
    TB, L = ids_ref.shape
    V_pad = table_ref.shape[0]

    ids = ids_ref[...]                                        # [TB, L] int32
    iota_v = lax.broadcasted_iota(jnp.int32, (TB, V_pad), 1)  # [TB, V_pad]

    # Token-count histogram per row (gather + pool become one MXU matmul).
    counts = jnp.zeros((TB, V_pad), jnp.float32)
    for l in range(L):  # static unroll; L is small here (TODO(synk): chunk for long L)
        counts = counts + (ids[:, l:l + 1] == iota_v).astype(jnp.float32)

    pooled = jnp.dot(counts.astype(jnp.bfloat16), table_ref[...],
                     preferred_element_type=jnp.float32)      # [TB, D] sum-pool
    rep = pooled * inv_ref[...]                               # mean = sum * (1/len)

    h = jnp.dot(rep.astype(jnp.bfloat16), w1_ref[...],
                preferred_element_type=jnp.float32) + b1_ref[...]
    h = jnp.maximum(h, 0.0)                                   # ReLU (f32)

    logits = jnp.dot(h.astype(jnp.bfloat16), w2_ref[...],
                     preferred_element_type=jnp.float32) + b2_ref[...]
    out_ref[...] = logits.astype(out_ref.dtype)               # lane-dense store


def baseline_dnn_forward(x_ids, lengths, emb_table, w1, b1, w2, b2):
    """x_ids: [B, L] int32 token ids, lengths: [B] (int or float)."""
    B, L = x_ids.shape
    V, D = emb_table.shape
    H = w1.shape[1]
    C = w2.shape[1]

    V_pad = _round_up(V, 128)          # lane dim of the counts matrix
    H_pad = _round_up(H, 128)          # 1000 -> 1024
    C_pad = _round_up(C, 128)          # lane-dense output slab

    # Batch tile: up to 256 rows (full-height v6e/v7x MXU tiles), but keep >= 2
    # grid steps when possible so the "parallel" axis feeds both v7x TensorCores.
    B8 = _round_up(B, 8)
    TB = min(256, B8)
    if B8 > 8 and B8 // TB < 2:
        TB = _round_up((B8 + 1) // 2, 8)
    B_pad = _round_up(B8, TB)

    # ----- wrapper-side layout / dtype plumbing (all zero-padded) -----
    ids_pad = jnp.zeros((B_pad, L), jnp.int32).at[:B, :].set(x_ids.astype(jnp.int32))
    len_f = jnp.maximum(lengths.astype(jnp.float32), 1.0)      # guard length == 0
    inv_len = jnp.ones((B_pad, 1), jnp.float32).at[:B, 0].set(1.0 / len_f)

    table_p = jnp.zeros((V_pad, D), jnp.bfloat16).at[:V, :].set(
        emb_table.astype(jnp.bfloat16))
    w1_p = jnp.pad(w1, ((0, 0), (0, H_pad - H))).astype(jnp.bfloat16)
    b1_p = jnp.pad(b1, (0, H_pad - H)).reshape(1, H_pad).astype(jnp.float32)
    w2_p = jnp.pad(w2, ((0, H_pad - H), (0, C_pad - C))).astype(jnp.bfloat16)
    b2_p = jnp.pad(b2, (0, C_pad - C)).reshape(1, C_pad).astype(jnp.float32)

    flops = 2 * B_pad * (V_pad * D + D * H_pad + H_pad * C_pad)
    bytes_acc = (B_pad * L * 4 + B_pad * 4 + V_pad * D * 2 + D * H_pad * 2
                 + H_pad * 4 + H_pad * C_pad * 2 + C_pad * 4 + B_pad * C_pad * 4)

    logits_pad = pl.pallas_call(
        fused_kernel,
        out_shape=jax.ShapeDtypeStruct((B_pad, C_pad), jnp.float32),
        grid_spec=pltpu.PrefetchScalarGridSpec(
            num_scalar_prefetch=0,
            grid=(B_pad // TB,),
            in_specs=[
                pl.BlockSpec((TB, L), lambda i: (i, 0)),         # ids tile
                pl.BlockSpec((TB, 1), lambda i: (i, 0)),         # 1/length tile
                pl.BlockSpec((V_pad, D), lambda i: (0, 0)),      # emb table (resident)
                pl.BlockSpec((D, H_pad), lambda i: (0, 0)),      # w1 (resident)
                pl.BlockSpec((1, H_pad), lambda i: (0, 0)),      # b1 (resident)
                pl.BlockSpec((H_pad, C_pad), lambda i: (0, 0)),  # w2 (resident)
                pl.BlockSpec((1, C_pad), lambda i: (0, 0)),      # b2 (resident)
            ],
            out_specs=pl.BlockSpec((TB, C_pad), lambda i: (i, 0)),
        ),
        compiler_params=pltpu.CompilerParams(
            dimension_semantics=("parallel",)),
        cost_estimate=pl.CostEstimate(
            flops=flops, transcendentals=0, bytes_accessed=bytes_acc),
    )(ids_pad, inv_len, table_p, w1_p, b1_p, w2_p, b2_p)

    return logits_pad[:B, :C]


if __name__ == "__main__":
    # Small deterministic setup consistent with the module:
    #   vocab=50, emb_dim=32, hidden=1000 (as in the module), output_size=4
    B, L = 2, 8
    V, D = 50, 32
    H = 1000
    C = 4

    key = jax.random.PRNGKey(0)
    k_emb, k_w1, k_b1, k_w2, k_b2, k_x = jax.random.split(key, 6)

    emb_table = jax.random.normal(k_emb, (V, D), dtype=jnp.float32) * 0.1
    # Linear weights stored pre-transposed ([in, out]) for the kernel matmuls.
    w1 = jax.random.normal(k_w1, (D, H), dtype=jnp.float32) * 0.05
    b1 = jax.random.normal(k_b1, (H,), dtype=jnp.float32) * 0.01
    w2 = jax.random.normal(k_w2, (H, C), dtype=jnp.float32) * 0.05
    b2 = jax.random.normal(k_b2, (C,), dtype=jnp.float32) * 0.01

    x_ids = jax.random.randint(k_x, (B, L), 0, V, dtype=jnp.int32)
    lengths = jnp.array([L, L - 3], dtype=jnp.int32)   # per-sample true lengths

    logits = baseline_dnn_forward(x_ids, lengths, emb_table, w1, b1, w2, b2)
    jax.block_until_ready(logits)

    # Pure-JAX reference using the same bf16-rounded table/weights and the same
    # bf16 matmul inputs the kernel uses (f32 accumulation on both sides).
    table_q = emb_table.astype(jnp.bfloat16).astype(jnp.float32)
    w1_q = w1.astype(jnp.bfloat16).astype(jnp.float32)
    w2_q = w2.astype(jnp.bfloat16).astype(jnp.float32)
    inv = 1.0 / jnp.maximum(lengths.astype(jnp.float32), 1.0)
    rep_ref = jnp.sum(table_q[x_ids], axis=1) * inv[:, None]
    h_ref = jnp.maximum(
        rep_ref.astype(jnp.bfloat16).astype(jnp.float32) @ w1_q + b1, 0.0)
    logits_ref = h_ref.astype(jnp.bfloat16).astype(jnp.float32) @ w2_q + b2

    assert logits.shape == (B, C)
    assert jnp.allclose(logits, logits_ref, atol=1e-2, rtol=1e-2), (
        float(jnp.max(jnp.abs(logits - logits_ref))))

    print("KERNEL_OK")
</pallas_src>

<mosaic_0001>
module attributes {stable_mosaic.version = 11 : i64} {
  func.func @fused_kernel(%arg0: i32, %arg1: memref<8x8xi32, #tpu.memory_space<vmem>>, %arg2: memref<8x1xf32, #tpu.memory_space<vmem>>, %arg3: memref<128x32xbf16, #tpu.memory_space<vmem>>, %arg4: memref<32x1024xbf16, #tpu.memory_space<vmem>>, %arg5: memref<1x1024xf32, #tpu.memory_space<vmem>>, %arg6: memref<1024x128xbf16, #tpu.memory_space<vmem>>, %arg7: memref<1x128xf32, #tpu.memory_space<vmem>>, %arg8: memref<8x128xf32, #tpu.memory_space<vmem>>) attributes {dimension_semantics = [#tpu.dimension_semantics<parallel>], iteration_bounds = array<i64: 1>, scalar_prefetch = 0 : i64, scratch_operands = 0 : i64, tpu.core_type = #tpu.core_type<tc>, window_params = [{transform_indices = @transform_0, window_bounds = array<i64: 8, 8>}, {transform_indices = @transform_1, window_bounds = array<i64: 8, 1>}, {pipeline_mode = #tpu.pipeline_mode<synchronous>, transform_indices = @transform_2, window_bounds = array<i64: 128, 32>}, {pipeline_mode = #tpu.pipeline_mode<synchronous>, transform_indices = @transform_3, window_bounds = array<i64: 32, 1024>}, {pipeline_mode = #tpu.pipeline_mode<synchronous>, transform_indices = @transform_4, window_bounds = array<i64: 1, 1024>}, {pipeline_mode = #tpu.pipeline_mode<synchronous>, transform_indices = @transform_5, window_bounds = array<i64: 1024, 128>}, {pipeline_mode = #tpu.pipeline_mode<synchronous>, transform_indices = @transform_6, window_bounds = array<i64: 1, 128>}, {transform_indices = @transform_7, window_bounds = array<i64: 8, 128>}]} {
    %c0 = arith.constant 0 : index
    %c0_0 = arith.constant 0 : index
    %0 = vector.load %arg1[%c0, %c0_0] : memref<8x8xi32, #tpu.memory_space<vmem>>, vector<8x8xi32>
    %1 = tpu.iota {dimensions = array<i32: 1>} : vector<8x128xi32>
    %cst = arith.constant 0.000000e+00 : f32
    %2 = vector.broadcast %cst : f32 to vector<8x128xf32>
    %3 = vector.extract_strided_slice %0 {offsets = [0, 0], sizes = [8, 1], strides = [1, 1]} : vector<8x8xi32> to vector<8x1xi32>
    %4 = vector.broadcast %3 : vector<8x1xi32> to vector<8x128xi32>
    %5 = arith.cmpi eq, %4, %1 : vector<8x128xi32>
    %6 = arith.extui %5 : vector<8x128xi1> to vector<8x128xi32>
    %7 = arith.sitofp %6 : vector<8x128xi32> to vector<8x128xf32>
    %8 = arith.addf %2, %7 : vector<8x128xf32>
    %9 = vector.extract_strided_slice %0 {offsets = [0, 1], sizes = [8, 1], strides = [1, 1]} : vector<8x8xi32> to vector<8x1xi32>
    %10 = vector.broadcast %9 : vector<8x1xi32> to vector<8x128xi32>
    %11 = arith.cmpi eq, %10, %1 : vector<8x128xi32>
    %12 = arith.extui %11 : vector<8x128xi1> to vector<8x128xi32>
    %13 = arith.sitofp %12 : vector<8x128xi32> to vector<8x128xf32>
    %14 = arith.addf %8, %13 : vector<8x128xf32>
    %15 = vector.extract_strided_slice %0 {offsets = [0, 2], sizes = [8, 1], strides = [1, 1]} : vector<8x8xi32> to vector<8x1xi32>
    %16 = vector.broadcast %15 : vector<8x1xi32> to vector<8x128xi32>
    %17 = arith.cmpi eq, %16, %1 : vector<8x128xi32>
    %18 = arith.extui %17 : vector<8x128xi1> to vector<8x128xi32>
    %19 = arith.sitofp %18 : vector<8x128xi32> to vector<8x128xf32>
    %20 = arith.addf %14, %19 : vector<8x128xf32>
    %21 = vector.extract_strided_slice %0 {offsets = [0, 3], sizes = [8, 1], strides = [1, 1]} : vector<8x8xi32> to vector<8x1xi32>
    %22 = vector.broadcast %21 : vector<8x1xi32> to vector<8x128xi32>
    %23 = arith.cmpi eq, %22, %1 : vector<8x128xi32>
    %24 = arith.extui %23 : vector<8x128xi1> to vector<8x128xi32>
    %25 = arith.sitofp %24 : vector<8x128xi32> to vector<8x128xf32>
    %26 = arith.addf %20, %25 : vector<8x128xf32>
    %27 = vector.extract_strided_slice %0 {offsets = [0, 4], sizes = [8, 1], strides = [1, 1]} : vector<8x8xi32> to vector<8x1xi32>
    %28 = vector.broadcast %27 : vector<8x1xi32> to vector<8x128xi32>
    %29 = arith.cmpi eq, %28, %1 : vector<8x128xi32>
    %30 = arith.extui %29 : vector<8x128xi1> to vector<8x128xi32>
    %31 = arith.sitofp %30 : vector<8x128xi32> to vector<8x128xf32>
    %32 = arith.addf %26, %31 : vector<8x128xf32>
    %33 = vector.extract_strided_slice %0 {offsets = [0, 5], sizes = [8, 1], strides = [1, 1]} : vector<8x8xi32> to vector<8x1xi32>
    %34 = vector.broadcast %33 : vector<8x1xi32> to vector<8x128xi32>
    %35 = arith.cmpi eq, %34, %1 : vector<8x128xi32>
    %36 = arith.extui %35 : vector<8x128xi1> to vector<8x128xi32>
    %37 = arith.sitofp %36 : vector<8x128xi32> to vector<8x128xf32>
    %38 = arith.addf %32, %37 : vector<8x128xf32>
    %39 = vector.extract_strided_slice %0 {offsets = [0, 6], sizes = [8, 1], strides = [1, 1]} : vector<8x8xi32> to vector<8x1xi32>
    %40 = vector.broadcast %39 : vector<8x1xi32> to vector<8x128xi32>
    %41 = arith.cmpi eq, %40, %1 : vector<8x128xi32>
    %42 = arith.extui %41 : vector<8x128xi1> to vector<8x128xi32>
    %43 = arith.sitofp %42 : vector<8x128xi32> to vector<8x128xf32>
    %44 = arith.addf %38, %43 : vector<8x128xf32>
    %45 = vector.extract_strided_slice %0 {offsets = [0, 7], sizes = [8, 1], strides = [1, 1]} : vector<8x8xi32> to vector<8x1xi32>
    %46 = vector.broadcast %45 : vector<8x1xi32> to vector<8x128xi32>
    %47 = arith.cmpi eq, %46, %1 : vector<8x128xi32>
    %48 = arith.extui %47 : vector<8x128xi1> to vector<8x128xi32>
    %49 = arith.sitofp %48 : vector<8x128xi32> to vector<8x128xf32>
    %50 = arith.addf %44, %49 : vector<8x128xf32>
    %51 = arith.truncf %50 : vector<8x128xf32> to vector<8x128xbf16>
    %c0_1 = arith.constant 0 : index
    %c0_2 = arith.constant 0 : index
    %52 = vector.load %arg3[%c0_1, %c0_2] : memref<128x32xbf16, #tpu.memory_space<vmem>>, vector<128x32xbf16>
    %cst_3 = arith.constant dense<0.000000e+00> : vector<8x32xf32>
    %53 = tpu.matmul %51, %52, %cst_3 {dimension_numbers = #tpu.dot_dimension_numbers<[1], [0], [0], [1], [0, 0, 1, 1], [], []>} : vector<8x128xbf16>, vector<128x32xbf16>, vector<8x32xf32> -> vector<8x32xf32>
    %c0_4 = arith.constant 0 : index
    %c0_5 = arith.constant 0 : index
    %54 = vector.load %arg2[%c0_4, %c0_5] : memref<8x1xf32, #tpu.memory_space<vmem>>, vector<8x1xf32>
    %55 = vector.broadcast %54 : vector<8x1xf32> to vector<8x32xf32>
    %56 = arith.mulf %53, %55 : vector<8x32xf32>
    %57 = arith.truncf %56 : vector<8x32xf32> to vector<8x32xbf16>
    %c0_6 = arith.constant 0 : index
    %c0_7 = arith.constant 0 : index
    %58 = vector.load %arg4[%c0_6, %c0_7] : memref<32x1024xbf16, #tpu.memory_space<vmem>>, vector<32x1024xbf16>
    %cst_8 = arith.constant dense<0.000000e+00> : vector<8x1024xf32>
    %59 = tpu.matmul %57, %58, %cst_8 {dimension_numbers = #tpu.dot_dimension_numbers<[1], [0], [0], [1], [0, 0, 1, 1], [], []>} : vector<8x32xbf16>, vector<32x1024xbf16>, vector<8x1024xf32> -> vector<8x1024xf32>
    %c0_9 = arith.constant 0 : index
    %c0_10 = arith.constant 0 : index
    %60 = vector.load %arg5[%c0_9, %c0_10] : memref<1x1024xf32, #tpu.memory_space<vmem>>, vector<1x1024xf32>
    %61 = vector.broadcast %60 : vector<1x1024xf32> to vector<8x1024xf32>
    %62 = arith.addf %59, %61 : vector<8x1024xf32>
    %cst_11 = arith.constant 0.000000e+00 : f32
    %63 = vector.broadcast %cst_11 : f32 to vector<8x1024xf32>
    %64 = arith.maximumf %62, %63 : vector<8x1024xf32>
    %65 = arith.truncf %64 : vector<8x1024xf32> to vector<8x1024xbf16>
    %c0_12 = arith.constant 0 : index
    %c0_13 = arith.constant 0 : index
    %66 = vector.load %arg6[%c0_12, %c0_13] : memref<1024x128xbf16, #tpu.memory_space<vmem>>, vector<1024x128xbf16>
    %cst_14 = arith.constant dense<0.000000e+00> : vector<8x128xf32>
    %67 = tpu.matmul %65, %66, %cst_14 {dimension_numbers = #tpu.dot_dimension_numbers<[1], [0], [0], [1], [0, 0, 1, 1], [], []>} : vector<8x1024xbf16>, vector<1024x128xbf16>, vector<8x128xf32> -> vector<8x128xf32>
    %c0_15 = arith.constant 0 : index
    %c0_16 = arith.constant 0 : index
    %68 = vector.load %arg7[%c0_15, %c0_16] : memref<1x128xf32, #tpu.memory_space<vmem>>, vector<1x128xf32>
    %69 = vector.broadcast %68 : vector<1x128xf32> to vector<8x128xf32>
    %70 = arith.addf %67, %69 : vector<8x128xf32>
    %c0_17 = arith.constant 0 : index
    %c0_18 = arith.constant 0 : index
    %71 = vector.load %arg8[%c0_17, %c0_18] : memref<8x128xf32, #tpu.memory_space<vmem>>, vector<8x128xf32>
    tpu.vector_store %arg8[%c0_17, %c0_18], %70 {strides = array<i32>} : memref<8x128xf32, #tpu.memory_space<vmem>>, vector<8x128xf32>,
    return
  }
  func.func @transform_0(%arg0: i32) -> (i32, i32) {
    %c0_i32 = arith.constant 0 : i32
    %c0_i32_0 = arith.constant 0 : i32
    return %arg0, %c0_i32 : i32, i32
  }
  func.func @transform_1(%arg0: i32) -> (i32, i32) {
    %c0_i32 = arith.constant 0 : i32
    %c0_i32_0 = arith.constant 0 : i32
    return %arg0, %c0_i32 : i32, i32
  }
  func.func @transform_2(%arg0: i32) -> (i32, i32) {
    %c0_i32 = arith.constant 0 : i32
    %c0_i32_0 = arith.constant 0 : i32
    %c0_i32_1 = arith.constant 0 : i32
    return %c0_i32, %c0_i32_0 : i32, i32
  }
  func.func @transform_3(%arg0: i32) -> (i32, i32) {
    %c0_i32 = arith.constant 0 : i32
    %c0_i32_0 = arith.constant 0 : i32
    %c0_i32_1 = arith.constant 0 : i32
    return %c0_i32, %c0_i32_0 : i32, i32
  }
  func.func @transform_4(%arg0: i32) -> (i32, i32) {
    %c0_i32 = arith.constant 0 : i32
    %c0_i32_0 = arith.constant 0 : i32
    %c0_i32_1 = arith.constant 0 : i32
    return %c0_i32, %c0_i32_0 : i32, i32
  }
  func.func @transform_5(%arg0: i32) -> (i32, i32) {
    %c0_i32 = arith.constant 0 : i32
    %c0_i32_0 = arith.constant 0 : i32
    %c0_i32_1 = arith.constant 0 : i32
    return %c0_i32, %c0_i32_0 : i32, i32
  }
  func.func @transform_6(%arg0: i32) -> (i32, i32) {
    %c0_i32 = arith.constant 0 : i32
    %c0_i32_0 = arith.constant 0 : i32
    %c0_i32_1 = arith.constant 0 : i32
    return %c0_i32, %c0_i32_0 : i32, i32
  }
  func.func @transform_7(%arg0: i32) -> (i32, i32) {
    %c0_i32 = arith.constant 0 : i32
    %c0_i32_0 = arith.constant 0 : i32
    return %arg0, %c0_i32 : i32, i32
  }
}

</mosaic_0001>

<bundles_post_ra>
// kernel: tpu_custom_call.1
= control target key start
LH: loop header
LB: loop body
LE: loop exit
PB: predicated region body
PF: predicated region fallthrough
CT: control target
= control target key end

     0   :  { %12 = vsyncpa [#allocation3], 0  ;;  %s1771_s0 = inlined_call_operand.vmem [shape: s32[8,8], index: 0, kind: input, shape index: {}]   ;;  %s1772_s1 = inlined_call_operand.vmem [shape: f32[8,1], index: 1, kind: input, shape index: {}]   ;;  %s1773_s2 = inlined_call_operand.vmem [shape: bf16[128,32], index: 2, kind: input, shape index: {}]   ;;  %s1774_s3 = inlined_call_operand.hbm [shape: bf16[32,1024], index: 3, kind: input, shape index: {}]   ;;  %s1775_s4 = inlined_call_operand.vmem [shape: f32[1,1024], index: 4, kind: input, shape index: {}]   ;;  %s1776_s5 = inlined_call_operand.hbm [shape: bf16[1024,128], index: 5, kind: input, shape index: {}]   ;;  %s1777_s6 = inlined_call_operand.vmem [shape: f32[1,128], index: 6, kind: input, shape index: {}]   ;;  %s1778_s7 = inlined_call_operand.hbm [shape: f32[8,128], index: 7, kind: output, shape index: {}]  }
   0x1   :  { %13 = vsyncpa [#allocation6], 0 }
   0x2   :  { %14 = vsyncpa [#allocation4], 0  ;;  %s25_s26 = sshll.u32 %s1774_s3, 4  ;;  %s1642_s27 = smov [#allocation2]   ;;  %s26_s26 = int_to_ptr.hbm [resolvable:$true] %s25_s26 }
   0x3   :  { %s27_s28 = sshll.u32 %s1642_s27, 4  ;;  %s40_s8 = sshll.u32 %s1776_s5, 4  ;;  %s28_s28 = int_to_ptr.vmem [resolvable:$true] %s27_s28  ;;  %s41_s8 = int_to_ptr.hbm [resolvable:$true] %s40_s8 }
   0x4   :  { %s1643_s9 = smov 512   ;;  %s1644_s10 = smov 32  }
   0x5   :  { %33 = dma.hbm_to_vmem [thread:$0]  %s26_s26, 2048, %s28_s28, [#allocation3], %s1643_s9, %s1643_s9, %s1644_s10  }
   0x6   :  { %s1645_s11 = smov [#allocation5]   ;;  %s1646_s13 = smov 64  }
   0x7   :  { %s42_s12 = sshll.u32 %s1645_s11, 4  ;;  %s1647_s14 = smov 4   ;;  %s43_s12 = int_to_ptr.vmem [resolvable:$true] %s42_s12 }
   0x8   :  { %48 = dma.hbm_to_vmem [thread:$0]  %s41_s8, 8192, %s43_s12, [#allocation6], %s1646_s13, %s1646_s13, %s1647_s14  }
   0x9   :  { %1636 = dma.done.wait [#allocation3], 2048  }
   0xa   :  { %1637 = vsyncadd [#allocation3], 4294965248 }
   0xb   :  { %1638 = dma.done.wait [#allocation6], 8192  }
   0xc   :  { %1639 = vsyncadd [#allocation6], 4294959104  ;;  %v1648_v0 = vmov 0   ;;  %v1649_v1 = vmov 2   ;;  %v1650_v2 = vmov 4   ;;  %v60_v3 = vld [vmem:[%s1771_s0] sm:$0xff]  ;;  %v61_v28 = vlaneseq }
   0xd   :  { %1554 = vset.pattern.permute.xlu0 %v1648_v0  ;;  %1556 = vset.pattern.permute.xlu1 %v1649_v1  ;;  %v1457_v4 = vld [vmem:[%s1773_s2 + $0x38] sm:$0xff]  ;;  %v1651_v5 = vmov 1   ;;  %v1652_v6 = vmov 3   ;;  %v1653_v7 = vmov 5   ;;  %v1654_v8 = vmov 6   ;;  %v1456_v10 = vld [vmem:[%s1773_s2 + $0x30] sm:$0xff] }
   0xe   :  { %1558 = vset.pattern.permute.xlu2 %v1650_v2  ;;  %64 = vperm.xlu0 %1554, %v60_v3   ;;  %v1655_v9 = vmov 7   ;;  %v1455_v11 = vld [vmem:[%s1773_s2 + $0x28] sm:$0xff]  ;;  %v1454_v12 = vld [vmem:[%s1773_s2 + $0x20] sm:$0xff]  ;;  %v1453_v13 = vld [vmem:[%s1773_s2 + $0x18] sm:$0xff]  ;;  %v62_v31 = vand.u32 127, %v61_v28  ;;  %v1656_v35 = vmov 0.0  }
   0xf   :  { %78 = vperm.xlu1 %1556, %v60_v3   ;;  %92 = vperm.xlu2 %1558, %v60_v3   ;;  %v1452_v14 = vld [vmem:[%s1773_s2 + $0x10] sm:$0xff]  ;;  %v1451_v15 = vld [vmem:[%s1773_s2 + $0x8] sm:$0xff]  ;;  %v1450_v16 = vld [vmem:[%s1773_s2] sm:$0xff]  ;;  %vm319_vm8 = vcmask 261120   ;;  %s1657_s10 = smov [#allocation7]  }
  0x10   :  { %184 = vmatpush.bf16.msra.mxu0 %v1457_v4  ;;  %v197_v18 = vld [vmem:[%s1772_s1] sm:$0xff]  ;;  %v1164_v24 = vld [vmem:[#allocation2 + $0x48] sm:$0xf]  ;;  %v1172_v63 = vld [vmem:[#allocation2 + $0x50] sm:$0xf]  ;;  %s1069_s11 = sshll.u32 %s1657_s10, 4  ;;  %s1070_s11 = int_to_ptr.vmem [resolvable:$true] %s1069_s11 }
  0x11   :  { %v1156_v19 = vld [vmem:[#allocation2 + $0x40] sm:$0xf]  ;;  %v1466_v22 = vld [vmem:[#allocation2 + $0x44] sm:$0xf]  ;;  %v1471_v26 = vld [vmem:[#allocation2 + $0x64] sm:$0xf0] }
  0x12   :  { %v1470_v20 = vld [vmem:[#allocation2 + $0x5c] sm:$0xf0]  ;;  %v1158_v23 = vld [vmem:[#allocation2 + $0x60] sm:$0xf0]  ;;  %v1165_v27 = vor.u32 %v1471_v26, %v1164_v24  ;;  %v1132_v59 = vld [vmem:[#allocation2 + $0x8] sm:$0xf] }
  0x13   :  { %v1157_v21 = vor.u32 %v1470_v20, %v1156_v19  ;;  %v1161_v25 = vor.u32 %v1466_v22, %v1158_v23  ;;  %v1124_v54 = vld [vmem:[#allocation2] sm:$0xf]  ;;  %v1458_v56 = vld [vmem:[#allocation2 + $0x4] sm:$0xf]  ;;  %v1463_v60 = vld [vmem:[#allocation2 + $0x24] sm:$0xf0] }
  0x14   :  { %185 = vmatpush.bf16.msra.mxu0 %v1456_v10  ;;  %355 = vmatpush.bf16.msra.mxu3 %v1165_v27  ;;  %v1462_v55 = vld [vmem:[#allocation2 + $0x1c] sm:$0xf0]  ;;  %v1126_v58 = vld [vmem:[#allocation2 + $0x20] sm:$0xf0]  ;;  %v1133_v62 = vor.u32 %v1463_v60, %v1132_v59  ;;  %v1467_v2 = vld [vmem:[#allocation2 + $0x4c] sm:$0xf] }
  0x15   :  { %329 = vmatpush.bf16.msra.mxu1 %v1157_v21  ;;  %342 = vmatpush.bf16.msra.mxu2 %v1161_v25  ;;  %v1125_v57 = vor.u32 %v1462_v55, %v1124_v54  ;;  %v1129_v61 = vor.u32 %v1458_v56, %v1126_v58  ;;  %v1140_v4 = vld [vmem:[#allocation2 + $0x10] sm:$0xf]  ;;  %v1182_v19 = vld [vmem:[#allocation2 + $0x78] sm:$0xf0]  ;;  %v1180_v21 = vld [vmem:[#allocation2 + $0x58] sm:$0xf] }
  0x16   :  { %1555 = vset.pattern.permute.xlu0 %v1651_v5  ;;  %v1473_v22 = vld [vmem:[#allocation2 + $0x74] sm:$0xf0]  ;;  %v1461_v26 = vld [vmem:[#allocation2 + $0x1c] sm:$0xf]  ;;  %v1494_v54 = vld [vmem:[#allocation5 + $0xa0] sm:$0xff] }
  0x17   :  { %1557 = vset.pattern.permute.xlu1 %v1652_v6  ;;  %71 = vperm.xlu0 %1555, %v60_v3   ;;  %v1464_v6 = vld [vmem:[#allocation2 + $0x2c] sm:$0xf0]  ;;  %v1150_v27 = vld [vmem:[#allocation2 + $0x38] sm:$0xf0]  ;;  %v1181_v28 = vor.u32 %v1473_v22, %v1180_v21  ;;  %v1474_v55 = vld [vmem:[#allocation5] sm:$0xff] }
  0x18   :  { %85 = vperm.xlu1 %1557, %v60_v3   ;;  %1559 = vset.pattern.permute.xlu2 %v1653_v7  ;;  %v1468_v7 = vld [vmem:[#allocation2 + $0x54] sm:$0xf]  ;;  %v1502_v56 = vld [vmem:[#allocation5 + $0xe0] sm:$0xff]  ;;  %v1513_v58 = vld [vmem:[#allocation5 + $0x138] sm:$0xff] }
  0x19   :  { %99 = vperm.xlu2 %1559, %v60_v3   ;;  %186 = vmatpush.bf16.msra.mxu0 %v1455_v11  ;;  %v1459_v11 = vld [vmem:[#allocation2 + $0xc] sm:$0xf]  ;;  %v1493_v59 = vld [vmem:[#allocation5 + $0x98] sm:$0xff] }
  0x1a   :  { %330 = vmatpush.bf16.msra.mxu1 %v1125_v57  ;;  %343 = vmatpush.bf16.msra.mxu2 %v1129_v61  ;;  %v1482_v57 = vld [vmem:[#allocation5 + $0x40] sm:$0xff]  ;;  %v1521_v60 = vld [vmem:[#allocation5 + $0x178] sm:$0xff]  ;;  %v1492_v61 = vld [vmem:[#allocation5 + $0x90] sm:$0xff] }
  0x1b   :  { %356 = vmatpush.bf16.msra.mxu3 %v1133_v62  ;;  %v1501_v62 = vld [vmem:[#allocation5 + $0xd8] sm:$0xff]  ;;  %v1515_v21 = vld [vmem:[#allocation5 + $0x148] sm:$0xff] }
  0x1c   :  { %v1535_v22 = vld [vmem:[#allocation5 + $0x1e8] sm:$0xff] }
  0x1d   :  { %187 = vmatpush.bf16.msra.mxu0 %v1454_v12  ;;  %v1134_v12 = vld [vmem:[#allocation2 + $0x28] sm:$0xf0] }
  0x1f   :  { %1562 = vset.pattern.permute.xlu0 %v1648_v0  ;;  %v1472_v0 = vld [vmem:[#allocation2 + $0x6c] sm:$0xf0] }
  0x20   :  { %1560 = vset.pattern.permute.xlu1 %v1654_v8  ;;  %200 = vperm.xlu0 %1562, %v197_v18   ;;  %v1173_v1 = vor.u32 %v1472_v0, %v1172_v63  ;;  %v1174_v8 = vld [vmem:[#allocation2 + $0x70] sm:$0xf0]  ;;  %v1469_v18 = vld [vmem:[#allocation2 + $0x5c] sm:$0xf] }
  0x21   :  { %106 = vperm.xlu1 %1560, %v60_v3   ;;  %1561 = vset.pattern.permute.xlu2 %v1655_v9  ;;  %v1141_v9 = vor.u32 %v1464_v6, %v1140_v4  ;;  %v1177_v10 = vor.u32 %v1468_v7, %v1174_v8  ;;  %v1185_v24 = vor.u32 %v1469_v18, %v1182_v19  ;;  %v1512_v63 = vld [vmem:[#allocation5 + $0x130] sm:$0xff]  ;;  %v1519_v4 = vld [vmem:[#allocation5 + $0x168] sm:$0xff]  ;;  %v1529_v6 = vld [vmem:[#allocation5 + $0x1b8] sm:$0xff] }
  0x22   :  { %113 = vperm.xlu2 %1561, %v60_v3   ;;  %188 = vmatpush.bf16.msra.mxu0 %v1453_v13  ;;  %v1166_v3 = vld [vmem:[#allocation2 + $0x68] sm:$0xf0]  ;;  %v1460_v13 = vld [vmem:[#allocation2 + $0x14] sm:$0xf]  ;;  %v1510_v8 = vld [vmem:[#allocation5 + $0x120] sm:$0xff] }
  0x23   :  { %381 = vmatpush.bf16.msrb.mxu2 %v1173_v1  ;;  %v1169_v5 = vor.u32 %v1467_v2, %v1166_v3  ;;  %394 = vmatpush.bf16.msrb.mxu3 %v1177_v10  ;;  %v1520_v0 = vld [vmem:[#allocation5 + $0x170] sm:$0xff]  ;;  %v1491_v1 = vld [vmem:[#allocation5 + $0x88] sm:$0xff]  ;;  %v1526_v19 = vld [vmem:[#allocation5 + $0x1a0] sm:$0xff] }
  0x24   :  { %v1500_v2 = vld [vmem:[#allocation5 + $0xd0] sm:$0xff]  ;;  %v1511_v3 = vld [vmem:[#allocation5 + $0x128] sm:$0xff] }
  0x25   :  { %368 = vmatpush.bf16.msrb.mxu1 %v1169_v5  ;;  %v1490_v5 = vld [vmem:[#allocation5 + $0x80] sm:$0xff]  ;;  %v1499_v7 = vld [vmem:[#allocation5 + $0xc8] sm:$0xff]  ;;  %v1528_v10 = vld [vmem:[#allocation5 + $0x1b0] sm:$0xff] }
  0x26   :  { %189 = vmatpush.bf16.msra.mxu0 %v1452_v14  ;;  %v1137_v14 = vor.u32 %v1459_v11, %v1134_v12  ;;  %v1498_v11 = vld [vmem:[#allocation5 + $0xc0] sm:$0xff]  ;;  %v1509_v12 = vld [vmem:[#allocation5 + $0x118] sm:$0xff]  ;;  %v1536_v18 = vld [vmem:[#allocation5 + $0x1f0] sm:$0xff] }
  0x27   :  { %382 = vmatpush.bf16.msrb.mxu2 %v1141_v9  ;;  %v1518_v9 = vld [vmem:[#allocation5 + $0x160] sm:$0xff] }
  0x29   :  { %369 = vmatpush.bf16.msrb.mxu1 %v1137_v14  ;;  %v1537_v14 = vld [vmem:[#allocation5 + $0x1f8] sm:$0xff] }
  0x2a   :  { %190 = vmatpush.bf16.msra.mxu0 %v1451_v15  ;;  %v1142_v15 = vld [vmem:[#allocation2 + $0x30] sm:$0xf0] }
  0x2e   :  { %191 = vmatpush.bf16.msra.mxu0 %v1450_v16  ;;  %v1145_v16 = vor.u32 %v1460_v13, %v1142_v15  ;;  %v1517_v13 = vld [vmem:[#allocation5 + $0x158] sm:$0xff]  ;;  %v1527_v15 = vld [vmem:[#allocation5 + $0x1a8] sm:$0xff] }
  0x30   :  { %395 = vmatpush.bf16.msrb.mxu3 %v1145_v16  ;;  %v1508_v16 = vld [vmem:[#allocation5 + $0x110] sm:$0xff] }
  0x69   :  { %v93_v17 = vpop.permute.xlu2 %92 }
  0x6a   :  { %vm94_vm4 = vcmp.eq.s32.totalorder %v93_v17, %v62_v31 }
  0x6b   :  { %v1086_v44 = vsel %vm94_vm4, 1.0, %v1656_v35 }
  0x73   :  { %v100_v32 = vpop.permute.xlu2 %99 }
  0x74   :  { %vm101_vm5 = vcmp.eq.s32.totalorder %v100_v32, %v62_v31  ;;  %v1489_v32 = vld [vmem:[#allocation5 + $0x78] sm:$0xff] }
  0x75   :  { %v1087_v47 = vsel %vm101_vm5, 1.0, %v1656_v35  ;;  %972 = vmatpush.bf16.msrb.mxu0 %v1489_v32 }
  0x7c   :  { %v114_v42 = vpop.permute.xlu2 %113 }
  0x7d   :  { %vm115_vm6 = vcmp.eq.s32.totalorder %v114_v42, %v62_v31  ;;  %v1497_v42 = vld [vmem:[#allocation5 + $0xb8] sm:$0xff] }
  0x7e   :  { %v1089_v50 = vsel %vm115_vm6, 1.0, %v1656_v35 }
  0x80   :  { %v65_v29 = vpop.permute.xlu0 %64 }
  0x81   :  { %v79_v30 = vpop.permute.xlu1 %78  ;;  %vm66_vm0 = vcmp.eq.s32.totalorder %v65_v29, %v62_v31  ;;  %v1148_v29 = vld [vmem:[#allocation2 + $0x18] sm:$0xf] }
  0x82   :  { %vm80_vm1 = vcmp.eq.s32.totalorder %v79_v30, %v62_v31  ;;  %v1082_v36 = vsel %vm66_vm0, 1.0, %v1656_v35  ;;  %v1465_v30 = vld [vmem:[#allocation2 + $0x34] sm:$0xf0] }
  0x83   :  { %v1084_v39 = vsel %vm80_vm1, 1.0, %v1656_v35 }
  0x89   :  { %v72_v33 = vpop.permute.xlu0 %71 }
  0x8a   :  { %v86_v34 = vpop.permute.xlu1 %85  ;;  %vm73_vm2 = vcmp.eq.s32.totalorder %v72_v33, %v62_v31  ;;  %v1153_v33 = vor.u32 %v1461_v26, %v1150_v27  ;;  %v1534_v26 = vld [vmem:[#allocation5 + $0x1e0] sm:$0xff] }
  0x8b   :  { %v1083_v37 = vsel %vm73_vm2, 1.0, %v1656_v35  ;;  %vm87_vm3 = vcmp.eq.s32.totalorder %v86_v34, %v62_v31  ;;  %v1149_v34 = vor.u32 %v1465_v30, %v1148_v29  ;;  %v1755_v27 = vld [vmem:[%s1775_s4] sm:$0xff]  ;;  %v1533_v30 = vld [vmem:[#allocation5 + $0x1d8] sm:$0xff] }
  0x8c   :  { %v76_v38 = vadd.f32 %v1083_v37, %v1082_v36  ;;  %v1085_v41 = vsel %vm87_vm3, 1.0, %v1656_v35  ;;  %v1488_v37 = vld [vmem:[#allocation5 + $0x70] sm:$0xff]  ;;  %v223_v29 = vperm.slane %v1755_v27, 0 }
  0x8d   :  { %973 = vmatpush.bf16.msrb.mxu0 %v1488_v37  ;;  %v1522_v37 = vld [vmem:[#allocation5 + $0x180] sm:$0xff] }
  0x8e   :  { %v83_v40 = vadd.f32 %v1084_v39, %v76_v38  ;;  %v1479_v38 = vld [vmem:[#allocation5 + $0x28] sm:$0xff] }
  0x8f   :  { %v1487_v39 = vld [vmem:[#allocation5 + $0x68] sm:$0xff] }
  0x90   :  { %v90_v43 = vadd.f32 %v1085_v41, %v83_v40  ;;  %v1478_v40 = vld [vmem:[#allocation5 + $0x20] sm:$0xff] }
  0x91   :  { %974 = vmatpush.bf16.msrb.mxu0 %v1487_v39  ;;  %v1486_v41 = vld [vmem:[#allocation5 + $0x60] sm:$0xff] }
  0x92   :  { %v97_v45 = vadd.f32 %v1086_v44, %v90_v43  ;;  %v201_v17 = vpop.permute.xlu0 %200  ;;  %v1477_v43 = vld [vmem:[#allocation5 + $0x18] sm:$0xff] }
  0x93   :  { %v107_v46 = vpop.permute.xlu1 %106  ;;  %v1505_v44 = vld [vmem:[#allocation5 + $0xf8] sm:$0xff] }
  0x94   :  { %vm108_vm7 = vcmp.eq.s32.totalorder %v107_v46, %v62_v31  ;;  %v104_v48 = vadd.f32 %v1087_v47, %v97_v45  ;;  %v1481_v31 = vld [vmem:[#allocation5 + $0x38] sm:$0xff]  ;;  %v1496_v46 = vld [vmem:[#allocation5 + $0xb0] sm:$0xff] }
  0x95   :  { %v1088_v49 = vsel %vm108_vm7, 1.0, %v1656_v35  ;;  %v1480_v35 = vld [vmem:[#allocation5 + $0x30] sm:$0xff]  ;;  %975 = vmatpush.bf16.msrb.mxu0 %v1486_v41  ;;  %v1485_v45 = vld [vmem:[#allocation5 + $0x58] sm:$0xff] }
  0x96   :  { %v111_v51 = vadd.f32 %v1088_v49, %v104_v48  ;;  %v1476_v47 = vld [vmem:[#allocation5 + $0x10] sm:$0xff] }
  0x97   :  { %v1504_v48 = vld [vmem:[#allocation5 + $0xf0] sm:$0xff] }
  0x98   :  { %v118_v52 = vadd.f32 %v1089_v50, %v111_v51  ;;  %v1484_v49 = vld [vmem:[#allocation5 + $0x50] sm:$0xff]  ;;  %v1495_v50 = vld [vmem:[#allocation5 + $0xa8] sm:$0xff] }
  0x99   :  { %976 = vmatpush.bf16.msrb.mxu0 %v1485_v45  ;;  %v1475_v51 = vld [vmem:[#allocation5 + $0x8] sm:$0xff] }
  0x9a   :  { %v119_v53 = vpack.c.bf16 %v118_v52, %v118_v52  ;;  %v1503_v52 = vld [vmem:[#allocation5 + $0xe8] sm:$0xff] }
  0x9c   :  { %192 = vmatmul.bf16.vlgmr.msra.gmra.mxu0 %v119_v53  ;;  %v1483_v53 = vld [vmem:[#allocation5 + $0x48] sm:$0xff] }
  0x9d   :  { %977 = vmatpush.bf16.msrb.mxu0 %v1484_v49 }
  0xa1   :  { %978 = vmatpush.bf16.msrb.mxu0 %v1483_v53 }
  0xa5   :  { %979 = vmatpush.bf16.msrb.mxu0 %v1482_v57  ;;  %v227_v57 = vperm.slane %v1755_v27, 4 }
  0xa9   :  { %1024 = vmatpush.bf16.msra.mxu0 %v1521_v60 }
  0xad   :  { %1025 = vmatpush.bf16.msra.mxu0 %v1520_v0 }
  0xb1   :  { %1026 = vmatpush.bf16.msra.mxu0 %v1519_v4 }
  0xb5   :  { %1027 = vmatpush.bf16.msra.mxu0 %v1518_v9 }
  0xb9   :  { %1028 = vmatpush.bf16.msra.mxu0 %v1517_v13 }
 0x119   :  { %v193_v20 = vpop.f32.mrf.mxu0 }
 0x11a   :  { %v203_v23 = vmul.f32 %v201_v17, %v193_v20  ;;  %v1516_v17 = vld [vmem:[#allocation5 + $0x150] sm:$0xff]  ;;  %v1507_v20 = vld [vmem:[#allocation5 + $0x108] sm:$0xff] }
 0x11b   :  { %1029 = vmatpush.bf16.msra.mxu0 %v1516_v17 }
 0x11c   :  { %v1734_v25 = vpack.c.bf16 %v203_v23, %v203_v23  ;;  %v1525_v23 = vld [vmem:[#allocation5 + $0x198] sm:$0xff] }
 0x11e   :  { %1186 = vmatmul.msk.bf16.vlgmr.msra.gmra.mxu1 %vm319_vm8, %v1734_v25  ;;  %1187 = vmatmul.msk.bf16.vlgmr.msra.gmra.mxu2 %vm319_vm8, %v1734_v25 }
 0x11f   :  { %1188 = vmatmul.msk.bf16.vlgmr.msra.gmra.mxu3 %vm319_vm8, %v1734_v25  ;;  %420 = vmatpush.bf16.msra.mxu2 %v1185_v24  ;;  %v1506_v24 = vld [vmem:[#allocation5 + $0x100] sm:$0xff] }
 0x120   :  { %407 = vmatpush.bf16.msra.mxu1 %v1181_v28  ;;  %959 = vmatpush.bf16.msra.mxu3 %v1481_v31  ;;  %v1524_v28 = vld [vmem:[#allocation5 + $0x190] sm:$0xff]  ;;  %v1523_v31 = vld [vmem:[#allocation5 + $0x188] sm:$0xff] }
 0x121   :  { %v195_v36 = vpop.f32.mrf.mxu0  ;;  %1030 = vmatpush.bf16.msra.mxu0 %v1515_v21 }
 0x122   :  { %v224_v36 = vperm.slane %v1755_v27, 1 }
 0x123   :  { %421 = vmatpush.bf16.msra.mxu2 %v1153_v33 }
 0x124   :  { %408 = vmatpush.bf16.msra.mxu1 %v1149_v34  ;;  %960 = vmatpush.bf16.msra.mxu3 %v1480_v35  ;;  %v1532_v34 = vld [vmem:[#allocation5 + $0x1d0] sm:$0xff] }
 0x128   :  { %961 = vmatpush.bf16.msra.mxu3 %v1479_v38  ;;  %v225_v38 = vperm.slane %v1755_v27, 2 }
 0x12c   :  { %962 = vmatpush.bf16.msra.mxu3 %v1478_v40  ;;  %v1531_v40 = vld [vmem:[#allocation5 + $0x1c8] sm:$0xff] }
 0x12e   :  { %1189 = vmatmul.msk.bf16.vlgmr.msrb.gmra.mxu1 %vm319_vm8, %v1734_v25  ;;  %1190 = vmatmul.msk.bf16.vlgmr.msrb.gmra.mxu2 %vm319_vm8, %v1734_v25 }
 0x12f   :  { %1191 = vmatmul.msk.bf16.vlgmr.msrb.gmra.mxu3 %vm319_vm8, %v1734_v25  ;;  %985 = vmatpush.bf16.msrb.mxu1 %v1497_v42 }
 0x130   :  { %963 = vmatpush.bf16.msra.mxu3 %v1477_v43  ;;  %998 = vmatpush.bf16.msrb.mxu2 %v1505_v44 }
 0x133   :  { %986 = vmatpush.bf16.msrb.mxu1 %v1496_v46 }
 0x134   :  { %964 = vmatpush.bf16.msra.mxu3 %v1476_v47  ;;  %999 = vmatpush.bf16.msrb.mxu2 %v1504_v48  ;;  %v1530_v47 = vld [vmem:[#allocation5 + $0x1c0] sm:$0xff] }
 0x137   :  { %987 = vmatpush.bf16.msrb.mxu1 %v1495_v50 }
 0x138   :  { %965 = vmatpush.bf16.msra.mxu3 %v1475_v51  ;;  %1000 = vmatpush.bf16.msrb.mxu2 %v1503_v52  ;;  %v226_v51 = vperm.slane %v1755_v27, 3 }
 0x13b   :  { %988 = vmatpush.bf16.msrb.mxu1 %v1494_v54 }
 0x13c   :  { %966 = vmatpush.bf16.msra.mxu3 %v1474_v55  ;;  %1001 = vmatpush.bf16.msrb.mxu2 %v1502_v56 }
 0x13e   :  { %1192 = vmatmul.msk.bf16.vlgmr.msra.gmra.mxu1 %vm319_vm8, %v1734_v25  ;;  %1193 = vmatmul.msk.bf16.vlgmr.msra.gmra.mxu2 %vm319_vm8, %v1734_v25  ;;  %v1514_v25 = vld [vmem:[#allocation5 + $0x140] sm:$0xff] }
 0x13f   :  { %989 = vmatpush.bf16.msrb.mxu1 %v1493_v59  ;;  %1031 = vmatpush.bf16.msra.mxu0 %v1514_v25  ;;  %v1563_v25 = vld [vmem:[%s1777_s6] ss:$0 sm:$0xff]  ;;  %s1071_s6 = sshll.u32 %s1778_s7, 4  ;;  %s1072_s6 = int_to_ptr.hbm [resolvable:$true] %s1071_s6 }
 0x140   :  { %1011 = vmatpush.bf16.msrb.mxu3 %v1513_v58  ;;  %1002 = vmatpush.bf16.msrb.mxu2 %v1501_v62  ;;  %v228_v58 = vperm.slane %v1755_v27, 5 }
 0x143   :  { %990 = vmatpush.bf16.msrb.mxu1 %v1492_v61 }
 0x144   :  { %1012 = vmatpush.bf16.msrb.mxu3 %v1512_v63  ;;  %1003 = vmatpush.bf16.msrb.mxu2 %v1500_v2 }
 0x147   :  { %991 = vmatpush.bf16.msrb.mxu1 %v1491_v1 }
 0x148   :  { %1013 = vmatpush.bf16.msrb.mxu3 %v1511_v3  ;;  %1004 = vmatpush.bf16.msrb.mxu2 %v1499_v7 }
 0x14b   :  { %992 = vmatpush.bf16.msrb.mxu1 %v1490_v5  ;;  %v229_v5 = vperm.slane %v1755_v27, 6 }
 0x14c   :  { %1014 = vmatpush.bf16.msrb.mxu3 %v1510_v8  ;;  %1005 = vmatpush.bf16.msrb.mxu2 %v1498_v11  ;;  %v230_v11 = vperm.slane %v1755_v27, 7 }
 0x14f   :  { %1037 = vmatpush.bf16.msra.mxu1 %v1529_v6 }
 0x150   :  { %1015 = vmatpush.bf16.msrb.mxu3 %v1509_v12  ;;  %1050 = vmatpush.bf16.msra.mxu2 %v1537_v14 }
 0x153   :  { %1038 = vmatpush.bf16.msra.mxu1 %v1528_v10 }
 0x154   :  { %1016 = vmatpush.bf16.msrb.mxu3 %v1508_v16  ;;  %1051 = vmatpush.bf16.msra.mxu2 %v1536_v18 }
 0x157   :  { %1039 = vmatpush.bf16.msra.mxu1 %v1527_v15 }
 0x158   :  { %1017 = vmatpush.bf16.msrb.mxu3 %v1507_v20  ;;  %1052 = vmatpush.bf16.msra.mxu2 %v1535_v22 }
 0x15b   :  { %1040 = vmatpush.bf16.msra.mxu1 %v1526_v19 }
 0x15c   :  { %1018 = vmatpush.bf16.msrb.mxu3 %v1506_v24  ;;  %1053 = vmatpush.bf16.msra.mxu2 %v1534_v26 }
 0x15f   :  { %1041 = vmatpush.bf16.msra.mxu1 %v1525_v23 }
 0x160   :  { %1054 = vmatpush.bf16.msra.mxu2 %v1533_v30 }
 0x163   :  { %1042 = vmatpush.bf16.msra.mxu1 %v1524_v28 }
 0x164   :  { %1055 = vmatpush.bf16.msra.mxu2 %v1532_v34 }
 0x167   :  { %1043 = vmatpush.bf16.msra.mxu1 %v1523_v31 }
 0x168   :  { %1056 = vmatpush.bf16.msra.mxu2 %v1531_v40 }
 0x16b   :  { %1044 = vmatpush.bf16.msra.mxu1 %v1522_v37 }
 0x16c   :  { %1057 = vmatpush.bf16.msra.mxu2 %v1530_v47 }
 0x19b   :  { %v332_v32 = vpop.f32.mrf.mxu1 }
 0x19c   :  { %v333_v33 = vadd.f32 %v332_v32, %v223_v29 }
 0x19e   :  { %v427_v35 = vmax.f32 %v333_v33, 0.0 }
 0x1a0   :  { %v435_v39 = vpack.c.bf16 %v427_v35, %v427_v35 }
 0x1a1   :  { %v345_v41 = vpop.f32.mrf.mxu2 }
 0x1a2   :  { %v346_v42 = vadd.f32 %v345_v41, %v224_v36  ;;  %v358_v43 = vpop.f32.mrf.mxu3  ;;  %967 = vmatmul.bf16.vlgmr.msra.gmra.mxu3 %v435_v39 }
 0x1a3   :  { %v359_v44 = vadd.f32 %v358_v43, %v225_v38  ;;  %v334_v45 = vpop.f32.mrf.mxu1 }
 0x1a4   :  { %v428_v46 = vmax.f32 %v346_v42, 0.0 }
 0x1a5   :  { %v429_v48 = vmax.f32 %v359_v44, 0.0 }
 0x1a6   :  { %v436_v49 = vpack.c.bf16 %v428_v46, %v428_v46 }
 0x1a7   :  { %v437_v50 = vpack.c.bf16 %v429_v48, %v429_v48 }
 0x1a8   :  { %980 = vmatmul.bf16.vlgmr.msrb.gmra.mxu0 %v436_v49 }
 0x1a9   :  { %993 = vmatmul.bf16.vlgmr.msrb.gmra.mxu1 %v437_v50  ;;  %v347_v52 = vpop.f32.mrf.mxu2 }
 0x1aa   :  { %v360_v53 = vpop.f32.mrf.mxu3 }
 0x1ab   :  { %v371_v54 = vpop.f32.mrf.mxu1 }
 0x1ac   :  { %v372_v55 = vadd.f32 %v371_v54, %v226_v51 }
 0x1ae   :  { %v430_v56 = vmax.f32 %v372_v55, 0.0 }
 0x1b0   :  { %v438_v59 = vpack.c.bf16 %v430_v56, %v430_v56 }
 0x1b1   :  { %v384_v60 = vpop.f32.mrf.mxu2 }
 0x1b2   :  { %v385_v61 = vadd.f32 %v384_v60, %v227_v57  ;;  %v397_v62 = vpop.f32.mrf.mxu3  ;;  %1006 = vmatmul.bf16.vlgmr.msrb.gmra.mxu2 %v438_v59 }
 0x1b3   :  { %v398_v63 = vadd.f32 %v397_v62, %v228_v58  ;;  %v373_v0 = vpop.f32.mrf.mxu1 }
 0x1b4   :  { %v431_v1 = vmax.f32 %v385_v61, 0.0 }
 0x1b5   :  { %v432_v2 = vmax.f32 %v398_v63, 0.0 }
 0x1b6   :  { %v439_v3 = vpack.c.bf16 %v431_v1, %v431_v1 }
 0x1b7   :  { %v440_v4 = vpack.c.bf16 %v432_v2, %v432_v2 }
 0x1b8   :  { %1019 = vmatmul.bf16.vlgmr.msrb.gmra.mxu3 %v439_v3 }
 0x1b9   :  { %1032 = vmatmul.bf16.vlgmr.msra.gmra.mxu0 %v440_v4  ;;  %v386_v6 = vpop.f32.mrf.mxu2 }
 0x1ba   :  { %v399_v7 = vpop.f32.mrf.mxu3 }
 0x1bb   :  { %v410_v8 = vpop.f32.mrf.mxu1 }
 0x1bc   :  { %v411_v9 = vadd.f32 %v410_v8, %v229_v5 }
 0x1be   :  { %v433_v10 = vmax.f32 %v411_v9, 0.0 }
 0x1c0   :  { %v441_v12 = vpack.c.bf16 %v433_v10, %v433_v10 }
 0x1c1   :  { %v423_v13 = vpop.f32.mrf.mxu2 }
 0x1c2   :  { %v424_v14 = vadd.f32 %v423_v13, %v230_v11  ;;  %1045 = vmatmul.bf16.vlgmr.msra.gmra.mxu1 %v441_v12 }
 0x1c3   :  { %v412_v15 = vpop.f32.mrf.mxu1 }
 0x1c4   :  { %v434_v16 = vmax.f32 %v424_v14, 0.0 }
 0x1c6   :  { %v442_v17 = vpack.c.bf16 %v434_v16, %v434_v16 }
 0x1c8   :  { %1058 = vmatmul.bf16.vlgmr.msra.gmra.mxu2 %v442_v17 }
 0x1c9   :  { %v425_v18 = vpop.f32.mrf.mxu2 }
 0x225   :  { %v968_v19 = vpop.f32.mrf.mxu3  ;;  %v981_v20 = vpop.f32.mrf.mxu0 }
 0x226   :  { %v994_v21 = vpop.f32.mrf.mxu1  ;;  %v969_v27 = vadd.f32 %v1563_v25, %v968_v19 }
 0x228   :  { %v982_v29 = vadd.f32 %v981_v20, %v969_v27 }
 0x22a   :  { %v995_v32 = vadd.f32 %v994_v21, %v982_v29 }
 0x22d   :  { %v970_v22 = vpop.f32.mrf.mxu3  ;;  %v983_v23 = vpop.f32.mrf.mxu0 }
 0x22e   :  { %v996_v24 = vpop.f32.mrf.mxu1 }
 0x235   :  { %v1007_v26 = vpop.f32.mrf.mxu2 }
 0x236   :  { %v1033_v28 = vpop.f32.mrf.mxu0  ;;  %v1008_v35 = vadd.f32 %v1007_v26, %v995_v32 }
 0x23b   :  { %v1020_v30 = vpop.f32.mrf.mxu3 }
 0x23c   :  { %v1021_v36 = vadd.f32 %v1020_v30, %v1008_v35 }
 0x23d   :  { %v1009_v31 = vpop.f32.mrf.mxu2 }
 0x23e   :  { %v1035_v33 = vpop.f32.mrf.mxu0  ;;  %v1034_v38 = vadd.f32 %v1033_v28, %v1021_v36 }
 0x23f   :  { %v1046_v34 = vpop.f32.mrf.mxu1 }
 0x240   :  { %v1047_v40 = vadd.f32 %v1046_v34, %v1034_v38 }
 0x243   :  { %v1022_v37 = vpop.f32.mrf.mxu3 }
 0x247   :  { %v1048_v39 = vpop.f32.mrf.mxu1 }
 0x24b   :  { %v1059_v41 = vpop.f32.mrf.mxu2 }
 0x24c   :  { %v1060_v42 = vadd.f32 %v1059_v41, %v1047_v40 }
 0x24e   :  { %1063 = vst [vmem:[#allocation7] sm:$0xff] %v1060_v42 }
 0x24f   :  { %1074 = dma.vmem_to_hbm [thread:$0]  %s1070_s11, 128, %s1072_s6, [#allocation4]  }
 0x253   :  { %v1061_v43 = vpop.f32.mrf.mxu2 }
 0x254   :  { %1640 = dma.done.wait [#allocation4], 128  }
 0x255   :  { %1641 = vsyncadd [#allocation4], 4294967168 }
 0x256   :  { %1079 = vsyncpa [#allocation3], 1 }
 0x257   :  { %1080 = vsyncpa [#allocation6], 1 }
 0x258   :  { %1081 = vsyncpa [#allocation4], 1 }

</bundles_post_ra>
